<compile_context>
chip_gen: v5e
topology: v5e:2x2
jax: 0.10.0
libtpu: 0.0.40
codegen_flags: <defaults>
</compile_context>

<pallas_src>
import math
from functools import partial

import jax
import jax.numpy as jnp
from jax.experimental import pallas as pl
from jax.experimental.pallas import tpu as pltpu


def _elu(x):
    # ELU(alpha=1): x if x > 0 else exp(x) - 1   (clamp keeps exp's arg <= 0)
    return jnp.where(x > 0, x, jnp.exp(jnp.minimum(x, 0.0)) - 1.0)


def _softplus(x):
    # numerically-stable softplus = log(1 + exp(x))
    return jnp.logaddexp(0.0, x)


def _actor_kernel(mean_scale, inv_mean_scale, init_std_param, out_features,
                  x_ref, w1_ref, b1_ref, w2_ref, b2_ref, w3_ref, b3_ref,
                  y_ref):
    cdt = w1_ref.dtype  # matmul operand dtype (bf16 by default)

    # Cast x here (free VPU work) rather than in the wrapper: removes an entire
    # extra XLA pass (HBM read+write) over the input before the kernel starts.
    x = x_ref[...].astype(cdt)

    # Hidden layer 1: Linear (MXU, f32 accumulate) + ELU (f32)
    h = jnp.dot(x, w1_ref[...], preferred_element_type=jnp.float32) + b1_ref[...]
    h = _elu(h).astype(cdt)
    # Hidden layer 2: Linear + ELU
    h = jnp.dot(h, w2_ref[...], preferred_element_type=jnp.float32) + b2_ref[...]
    h = _elu(h).astype(cdt)
    # Output layer: Linear (no activation), produces (TB, 2 * out_features)
    y = jnp.dot(h, w3_ref[...], preferred_element_type=jnp.float32) + b3_ref[...]

    # Lane-aligned epilogue: compute both branches elementwise on the full tile
    # and select per lane -> no cross-lane slice / relayout inside the kernel.
    lane = jax.lax.broadcasted_iota(jnp.int32, y.shape, 1)
    is_mu = lane < out_features

    mu_branch = mean_scale * jnp.tanh(y * inv_mean_scale)
    std_branch = _softplus(jnp.maximum(y, -18.0) + init_std_param) + 1e-7

    # Single lane-contiguous store: [mu | std] packed in the last dim.
    y_ref[...] = jnp.where(is_mu, mu_branch, std_branch).astype(y_ref.dtype)


def _round_up(v, m):
    return ((v + m - 1) // m) * m


def prepare_actor_params(params, compute_dtype=jnp.bfloat16):
    """Cast params ONCE (outside the hot path): weights -> compute_dtype for
    the MXU, biases -> f32 (added to the f32 accumulator)."""
    w1, b1, w2, b2, w3, b3 = params
    return (w1.astype(compute_dtype), b1.astype(jnp.float32),
            w2.astype(compute_dtype), b2.astype(jnp.float32),
            w3.astype(compute_dtype), b3.astype(jnp.float32))


def actor_forward(x, prepared_params, *, mean_scale=1.0, init_std=2.0,
                  batch_tile=4096, out_dtype=jnp.float32):
    """Actor forward pass.

    Returns a packed (B, 2*out_features) array: columns [:out] hold mu of the
    base Normal, columns [out:] hold std. Packed on purpose so the kernel does
    one lane-contiguous store and the wrapper adds zero extra HBM passes;
    consumers index the halves (see split_mu_std).
    out_dtype defaults to f32 (std's 1e-7 floor is poorly resolved in bf16).
    """
    w1c, b1f, w2c, b2f, w3c, b3f = prepared_params
    B, in_features = x.shape
    two_out = w3c.shape[1]
    out_features = two_out // 2

    mean_scale = float(mean_scale)
    inv_mean_scale = 1.0 / mean_scale
    init_std_param = float(math.log(math.exp(init_std) - 1.0))

    # Batch tile: multiple of 8 sublanes. Per-tile footprint is tiny (x (tb,32)
    # + y (tb,16) + ~7K params ~= low MB even at tb=4096, double-buffered), so
    # the only cap is not exceeding the batch; bigger tiles cut grid-step
    # overhead (~0.35 us/step) and improve HBM-roofline fraction.
    tb = min(_round_up(max(B, 1), 8), batch_tile)
    # Ragged last block is fine: out-of-bounds output rows are dropped, so no
    # jnp.pad (which would copy the whole input) is needed.
    grid = (pl.cdiv(B, tb),)

    def resident(arr):
        # Constant block index -> stays VMEM-resident across all grid steps.
        nd = arr.ndim
        return pl.BlockSpec(arr.shape, lambda i, _nd=nd: (0,) * _nd)

    y = pl.pallas_call(
        partial(_actor_kernel, mean_scale, inv_mean_scale,
                init_std_param, out_features),
        out_shape=jax.ShapeDtypeStruct((B, two_out), out_dtype),
        grid=grid,
        in_specs=[
            pl.BlockSpec((tb, in_features), lambda i: (i, 0)),
            resident(w1c), resident(b1f),
            resident(w2c), resident(b2f),
            resident(w3c), resident(b3f),
        ],
        out_specs=pl.BlockSpec((tb, two_out), lambda i: (i, 0)),
        compiler_params=pltpu.CompilerParams(
            dimension_semantics=("parallel",)),
    )(x, w1c, b1f, w2c, b2f, w3c, b3f)
    return y


def split_mu_std(y):
    """Convenience split of the packed kernel output (done by the consumer,
    outside the kernel hot path)."""
    out = y.shape[-1] // 2
    return y[:, :out], y[:, out:]


def init_actor_params(key, in_features, layers, out_features):
    """Deterministic synthetic params. build_mlp((in, *layers, 2*out)):
       Linear -> ELU -> ... -> Linear (no activation on last layer)."""
    dims = (in_features, *layers, 2 * out_features)
    params = []
    for i in range(len(dims) - 1):
        key, kw, kb = jax.random.split(key, 3)
        fan_in = dims[i]
        scale = 1.0 / math.sqrt(fan_in)
        w = jax.random.uniform(kw, (dims[i], dims[i + 1]), jnp.float32,
                               minval=-scale, maxval=scale)
        b = jax.random.uniform(kb, (1, dims[i + 1]), jnp.float32,
                               minval=-scale, maxval=scale)
        params.extend([w, b])
    return tuple(params)


def actor_forward_ref(x, params, *, mean_scale=1.0, init_std=2.0,
                      compute_dtype=jnp.float32):
    """Pure-JAX reference (same operand dtypes as the kernel)."""
    w1, b1, w2, b2, w3, b3 = params
    cd = compute_dtype
    mean_scale = float(mean_scale)
    inv_mean_scale = 1.0 / mean_scale
    h = jnp.dot(x.astype(cd), w1.astype(cd),
                preferred_element_type=jnp.float32) + b1.astype(jnp.float32)
    h = _elu(h).astype(cd)
    h = jnp.dot(h, w2.astype(cd),
                preferred_element_type=jnp.float32) + b2.astype(jnp.float32)
    h = _elu(h).astype(cd)
    y = jnp.dot(h, w3.astype(cd),
                preferred_element_type=jnp.float32) + b3.astype(jnp.float32)
    out = y.shape[-1] // 2
    mu, std = y[:, :out], y[:, out:]
    mu = mean_scale * jnp.tanh(mu * inv_mean_scale)
    std = jnp.maximum(std, -18.0)
    init_std_param = math.log(math.exp(init_std) - 1.0)
    std = _softplus(std + init_std_param) + 1e-7
    return mu, std


if __name__ == "__main__":
    # Small shapes consistent with the module: batch=8, in=32, layers=(64,64), out=8
    B, IN, LAYERS, OUT = 8, 32, (64, 64), 8

    key = jax.random.PRNGKey(0)
    key, kx = jax.random.split(key)
    x = jax.random.normal(kx, (B, IN), jnp.float32)
    params = init_actor_params(key, IN, LAYERS, OUT)

    # f32 path: tight check against the pure-JAX reference.
    p32 = prepare_actor_params(params, jnp.float32)
    y32 = actor_forward(x, p32, mean_scale=1.0, init_std=2.0)
    jax.block_until_ready(y32)
    mu32, std32 = split_mu_std(y32)
    mu_ref32, std_ref32 = actor_forward_ref(x, params, mean_scale=1.0,
                                            init_std=2.0,
                                            compute_dtype=jnp.float32)
    assert mu32.shape == (B, OUT) and std32.shape == (B, OUT)
    assert jnp.allclose(mu32, mu_ref32, atol=1e-5, rtol=1e-5)
    assert jnp.allclose(std32, std_ref32, atol=1e-5, rtol=1e-5)

    # Ragged batch / multi-step grid path (B not a multiple of the tile; no pad):
    B_RAGGED = 13
    key, kx2 = jax.random.split(key)
    xr = jax.random.normal(kx2, (B_RAGGED, IN), jnp.float32)
    yr = actor_forward(xr, p32, mean_scale=1.0, init_std=2.0, batch_tile=8)
    jax.block_until_ready(yr)
    mur, stdr = split_mu_std(yr)
    mur_ref, stdr_ref = actor_forward_ref(xr, params, mean_scale=1.0,
                                          init_std=2.0,
                                          compute_dtype=jnp.float32)
    assert mur.shape == (B_RAGGED, OUT) and stdr.shape == (B_RAGGED, OUT)
    assert jnp.allclose(mur, mur_ref, atol=1e-5, rtol=1e-5)
    assert jnp.allclose(stdr, stdr_ref, atol=1e-5, rtol=1e-5)

    # bf16-matmul path (default prepare): compare against a reference using the
    # same operand dtypes (f32 accumulation in both).
    pbf16 = prepare_actor_params(params, jnp.bfloat16)
    y = actor_forward(x, pbf16, mean_scale=1.0, init_std=2.0)
    jax.block_until_ready(y)
    mu, std = split_mu_std(y)
    mu_ref, std_ref = actor_forward_ref(x, params, mean_scale=1.0,
                                        init_std=2.0,
                                        compute_dtype=jnp.bfloat16)
    assert jnp.allclose(mu, mu_ref, atol=2e-3, rtol=2e-3)
    assert jnp.allclose(std, std_ref, atol=2e-3, rtol=2e-3)
    assert bool(jnp.all(std > 0))

    # TODO(synk): TransformedDistribution(Normal, TanhTransform) + Independent has no
    # Pallas equivalent; the kernel returns the distribution parameters (mu, std).
    print("KERNEL_OK")
</pallas_src>

<mosaic_0001>
module attributes {stable_mosaic.version = 11 : i64} {
  func.func @_actor_kernel(%arg0: i32, %arg1: memref<8x32xf32, #tpu.memory_space<vmem>>, %arg2: memref<32x64xf32, #tpu.memory_space<vmem>>, %arg3: memref<1x64xf32, #tpu.memory_space<vmem>>, %arg4: memref<64x64xf32, #tpu.memory_space<vmem>>, %arg5: memref<1x64xf32, #tpu.memory_space<vmem>>, %arg6: memref<64x16xf32, #tpu.memory_space<vmem>>, %arg7: memref<1x16xf32, #tpu.memory_space<vmem>>, %arg8: memref<8x16xf32, #tpu.memory_space<vmem>>) attributes {dimension_semantics = [#tpu.dimension_semantics<parallel>], iteration_bounds = array<i64: 1>, scalar_prefetch = 0 : i64, scratch_operands = 0 : i64, tpu.core_type = #tpu.core_type<tc>, window_params = [{transform_indices = @transform_0, window_bounds = array<i64: 8, 32>}, {pipeline_mode = #tpu.pipeline_mode<synchronous>, transform_indices = @transform_1, window_bounds = array<i64: 32, 64>}, {pipeline_mode = #tpu.pipeline_mode<synchronous>, transform_indices = @transform_2, window_bounds = array<i64: 1, 64>}, {pipeline_mode = #tpu.pipeline_mode<synchronous>, transform_indices = @transform_3, window_bounds = array<i64: 64, 64>}, {pipeline_mode = #tpu.pipeline_mode<synchronous>, transform_indices = @transform_4, window_bounds = array<i64: 1, 64>}, {pipeline_mode = #tpu.pipeline_mode<synchronous>, transform_indices = @transform_5, window_bounds = array<i64: 64, 16>}, {pipeline_mode = #tpu.pipeline_mode<synchronous>, transform_indices = @transform_6, window_bounds = array<i64: 1, 16>}, {transform_indices = @transform_7, window_bounds = array<i64: 8, 16>}]} {
    %c0 = arith.constant 0 : index
    %c0_0 = arith.constant 0 : index
    %0 = vector.load %arg1[%c0, %c0_0] : memref<8x32xf32, #tpu.memory_space<vmem>>, vector<8x32xf32>
    %c0_1 = arith.constant 0 : index
    %c0_2 = arith.constant 0 : index
    %1 = vector.load %arg2[%c0_1, %c0_2] : memref<32x64xf32, #tpu.memory_space<vmem>>, vector<32x64xf32>
    %cst = arith.constant dense<0.000000e+00> : vector<8x64xf32>
    %2 = tpu.matmul %0, %1, %cst {dimension_numbers = #tpu.dot_dimension_numbers<[1], [0], [0], [1], [0, 0, 1, 1], [], []>} : vector<8x32xf32>, vector<32x64xf32>, vector<8x64xf32> -> vector<8x64xf32>
    %c0_3 = arith.constant 0 : index
    %c0_4 = arith.constant 0 : index
    %3 = vector.load %arg3[%c0_3, %c0_4] : memref<1x64xf32, #tpu.memory_space<vmem>>, vector<1x64xf32>
    %4 = vector.broadcast %3 : vector<1x64xf32> to vector<8x64xf32>
    %5 = arith.addf %2, %4 : vector<8x64xf32>
    %cst_5 = arith.constant 0.000000e+00 : f32
    %6 = vector.broadcast %cst_5 : f32 to vector<8x64xf32>
    %7 = arith.cmpf ogt, %5, %6 : vector<8x64xf32>
    %cst_6 = arith.constant 0.000000e+00 : f32
    %8 = vector.broadcast %cst_6 : f32 to vector<8x64xf32>
    %9 = arith.minimumf %5, %8 : vector<8x64xf32>
    %10 = math.exp %9 : vector<8x64xf32>
    %cst_7 = arith.constant 1.000000e+00 : f32
    %11 = vector.broadcast %cst_7 : f32 to vector<8x64xf32>
    %12 = arith.subf %10, %11 : vector<8x64xf32>
    %13 = arith.select %7, %5, %12 : vector<8x64xi1>, vector<8x64xf32>
    %c0_8 = arith.constant 0 : index
    %c0_9 = arith.constant 0 : index
    %14 = vector.load %arg4[%c0_8, %c0_9] : memref<64x64xf32, #tpu.memory_space<vmem>>, vector<64x64xf32>
    %cst_10 = arith.constant dense<0.000000e+00> : vector<8x64xf32>
    %15 = tpu.matmul %13, %14, %cst_10 {dimension_numbers = #tpu.dot_dimension_numbers<[1], [0], [0], [1], [0, 0, 1, 1], [], []>} : vector<8x64xf32>, vector<64x64xf32>, vector<8x64xf32> -> vector<8x64xf32>
    %c0_11 = arith.constant 0 : index
    %c0_12 = arith.constant 0 : index
    %16 = vector.load %arg5[%c0_11, %c0_12] : memref<1x64xf32, #tpu.memory_space<vmem>>, vector<1x64xf32>
    %17 = vector.broadcast %16 : vector<1x64xf32> to vector<8x64xf32>
    %18 = arith.addf %15, %17 : vector<8x64xf32>
    %cst_13 = arith.constant 0.000000e+00 : f32
    %19 = vector.broadcast %cst_13 : f32 to vector<8x64xf32>
    %20 = arith.cmpf ogt, %18, %19 : vector<8x64xf32>
    %cst_14 = arith.constant 0.000000e+00 : f32
    %21 = vector.broadcast %cst_14 : f32 to vector<8x64xf32>
    %22 = arith.minimumf %18, %21 : vector<8x64xf32>
    %23 = math.exp %22 : vector<8x64xf32>
    %cst_15 = arith.constant 1.000000e+00 : f32
    %24 = vector.broadcast %cst_15 : f32 to vector<8x64xf32>
    %25 = arith.subf %23, %24 : vector<8x64xf32>
    %26 = arith.select %20, %18, %25 : vector<8x64xi1>, vector<8x64xf32>
    %c0_16 = arith.constant 0 : index
    %c0_17 = arith.constant 0 : index
    %27 = vector.load %arg6[%c0_16, %c0_17] : memref<64x16xf32, #tpu.memory_space<vmem>>, vector<64x16xf32>
    %cst_18 = arith.constant dense<0.000000e+00> : vector<8x16xf32>
    %28 = tpu.matmul %26, %27, %cst_18 {dimension_numbers = #tpu.dot_dimension_numbers<[1], [0], [0], [1], [0, 0, 1, 1], [], []>} : vector<8x64xf32>, vector<64x16xf32>, vector<8x16xf32> -> vector<8x16xf32>
    %c0_19 = arith.constant 0 : index
    %c0_20 = arith.constant 0 : index
    %29 = vector.load %arg7[%c0_19, %c0_20] : memref<1x16xf32, #tpu.memory_space<vmem>>, vector<1x16xf32>
    %30 = vector.broadcast %29 : vector<1x16xf32> to vector<8x16xf32>
    %31 = arith.addf %28, %30 : vector<8x16xf32>
    %32 = tpu.iota {dimensions = array<i32: 1>} : vector<8x16xi32>
    %c8_i32 = arith.constant 8 : i32
    %33 = vector.broadcast %c8_i32 : i32 to vector<8x16xi32>
    %34 = arith.cmpi slt, %32, %33 : vector<8x16xi32>
    %cst_21 = arith.constant 1.000000e+00 : f32
    %35 = vector.broadcast %cst_21 : f32 to vector<8x16xf32>
    %36 = arith.mulf %31, %35 : vector<8x16xf32>
    %37 = math.tanh %36 : vector<8x16xf32>
    %cst_22 = arith.constant 1.000000e+00 : f32
    %38 = vector.broadcast %cst_22 : f32 to vector<8x16xf32>
    %39 = arith.mulf %38, %37 : vector<8x16xf32>
    %cst_23 = arith.constant -1.800000e+01 : f32
    %40 = vector.broadcast %cst_23 : f32 to vector<8x16xf32>
    %41 = arith.maximumf %31, %40 : vector<8x16xf32>
    %cst_24 = arith.constant 1.8545866 : f32
    %42 = vector.broadcast %cst_24 : f32 to vector<8x16xf32>
    %43 = arith.addf %41, %42 : vector<8x16xf32>
    %cst_25 = arith.constant 0.000000e+00 : f32
    %44 = vector.broadcast %cst_25 : f32 to vector<8x16xf32>
    %45 = arith.maximumf %44, %43 : vector<8x16xf32>
    %46 = vector.broadcast %cst_25 : f32 to vector<8x16xf32>
    %47 = arith.subf %46, %43 : vector<8x16xf32>
    %48 = arith.cmpf one, %47, %47 : vector<8x16xf32>
    %49 = vector.broadcast %cst_25 : f32 to vector<8x16xf32>
    %50 = arith.addf %49, %43 : vector<8x16xf32>
    %51 = math.absf %47 : vector<8x16xf32>
    %cst_26 = arith.constant 0.000000e+00 : f32
    %52 = vector.broadcast %cst_26 : f32 to vector<8x16xf32>
    %53 = arith.subf %52, %51 : vector<8x16xf32>
    %54 = math.exp %53 : vector<8x16xf32>
    %55 = math.log1p %54 : vector<8x16xf32>
    %56 = arith.addf %45, %55 : vector<8x16xf32>
    %57 = arith.select %48, %50, %56 : vector<8x16xi1>, vector<8x16xf32>
    %cst_27 = arith.constant 1.000000e-07 : f32
    %58 = vector.broadcast %cst_27 : f32 to vector<8x16xf32>
    %59 = arith.addf %57, %58 : vector<8x16xf32>
    %60 = arith.select %34, %39, %59 : vector<8x16xi1>, vector<8x16xf32>
    %c0_28 = arith.constant 0 : index
    %c0_29 = arith.constant 0 : index
    %61 = vector.load %arg8[%c0_28, %c0_29] : memref<8x16xf32, #tpu.memory_space<vmem>>, vector<8x16xf32>
    tpu.vector_store %arg8[%c0_28, %c0_29], %60 {strides = array<i32>} : memref<8x16xf32, #tpu.memory_space<vmem>>, vector<8x16xf32>,
    return
  }
  func.func @transform_0(%arg0: i32) -> (i32, i32) {
    %c0_i32 = arith.constant 0 : i32
    %c0_i32_0 = arith.constant 0 : i32
    return %arg0, %c0_i32 : i32, i32
  }
  func.func @transform_1(%arg0: i32) -> (i32, i32) {
    %c0_i32 = arith.constant 0 : i32
    %c0_i32_0 = arith.constant 0 : i32
    %c0_i32_1 = arith.constant 0 : i32
    return %c0_i32, %c0_i32_0 : i32, i32
  }
  func.func @transform_2(%arg0: i32) -> (i32, i32) {
    %c0_i32 = arith.constant 0 : i32
    %c0_i32_0 = arith.constant 0 : i32
    %c0_i32_1 = arith.constant 0 : i32
    return %c0_i32, %c0_i32_0 : i32, i32
  }
  func.func @transform_3(%arg0: i32) -> (i32, i32) {
    %c0_i32 = arith.constant 0 : i32
    %c0_i32_0 = arith.constant 0 : i32
    %c0_i32_1 = arith.constant 0 : i32
    return %c0_i32, %c0_i32_0 : i32, i32
  }
  func.func @transform_4(%arg0: i32) -> (i32, i32) {
    %c0_i32 = arith.constant 0 : i32
    %c0_i32_0 = arith.constant 0 : i32
    %c0_i32_1 = arith.constant 0 : i32
    return %c0_i32, %c0_i32_0 : i32, i32
  }
  func.func @transform_5(%arg0: i32) -> (i32, i32) {
    %c0_i32 = arith.constant 0 : i32
    %c0_i32_0 = arith.constant 0 : i32
    %c0_i32_1 = arith.constant 0 : i32
    return %c0_i32, %c0_i32_0 : i32, i32
  }
  func.func @transform_6(%arg0: i32) -> (i32, i32) {
    %c0_i32 = arith.constant 0 : i32
    %c0_i32_0 = arith.constant 0 : i32
    %c0_i32_1 = arith.constant 0 : i32
    return %c0_i32, %c0_i32_0 : i32, i32
  }
  func.func @transform_7(%arg0: i32) -> (i32, i32) {
    %c0_i32 = arith.constant 0 : i32
    %c0_i32_0 = arith.constant 0 : i32
    return %arg0, %c0_i32 : i32, i32
  }
}

</mosaic_0001>

<bundles_post_ra>
// kernel: tpu_custom_call.1
= control target key start
LH: loop header
LB: loop body
LE: loop exit
PB: predicated region body
PF: predicated region fallthrough
CT: control target
= control target key end

     0   :  { %12 = vsyncpa [#allocation3], 0  ;;  %s391_s0 = inlined_call_operand.vmem [shape: f32[8,32], index: 0, kind: input, shape index: {}]   ;;  %s392_s1 = inlined_call_operand.hbm [shape: f32[32,64], index: 1, kind: input, shape index: {}]   ;;  %s393_s2 = inlined_call_operand.vmem [shape: f32[1,64], index: 2, kind: input, shape index: {}]   ;;  %s394_s3 = inlined_call_operand.vmem [shape: f32[64,64], index: 3, kind: input, shape index: {}]   ;;  %s395_s4 = inlined_call_operand.vmem [shape: f32[1,64], index: 4, kind: input, shape index: {}]   ;;  %s396_s5 = inlined_call_operand.vmem [shape: f32[64,16], index: 5, kind: input, shape index: {}]   ;;  %s397_s6 = inlined_call_operand.vmem [shape: f32[1,16], index: 6, kind: input, shape index: {}]   ;;  %s398_s7 = inlined_call_operand.hbm [shape: f32[8,16], index: 7, kind: output, shape index: {}]  }
   0x1   :  { %13 = vsyncpa [#allocation4], 0  ;;  %s20_s26 = sshll.u32 %s392_s1, 4  ;;  %s279_s27 = smov [#allocation2]   ;;  %s21_s26 = int_to_ptr.hbm [resolvable:$true] %s20_s26 }
   0x2   :  { %s22_s28 = sshll.u32 %s279_s27, 4  ;;  %s280_s29 = smov 128   ;;  %s23_s28 = int_to_ptr.vmem [resolvable:$true] %s22_s28 }
   0x3   :  { %s281_s30 = smov 8  }
   0x4   :  { %28 = dma.hbm_to_vmem [thread:$0]  %s21_s26, 512, %s23_s28, [#allocation3], %s280_s29, %s280_s29, %s281_s30  }
   0x5   :  { %275 = dma.done.wait [#allocation3], 512  }
   0x6   :  { %276 = vsyncadd [#allocation3], 4294966784  ;;  %v47_v0 = vld [vmem:[#allocation2 + $0x18] sm:$0xff]  ;;  %v46_v1 = vld [vmem:[#allocation2 + $0x10] sm:$0xff]  ;;  %vm52_vm0 = vcmask 261120   ;;  %vm94_vm1 = vcmask 523264   ;;  %v159_v51 = vlaneseq }
   0x7   :  { %68 = vmatpush.msra.mxu0 %v47_v0  ;;  %v45_v2 = vld [vmem:[#allocation2 + $0x8] sm:$0xff]  ;;  %v44_v3 = vld [vmem:[#allocation2] sm:$0xff]  ;;  %v89_v5 = vld [vmem:[%s394_s3 + $0x38] sm:$0xff]  ;;  %s195_s20 = sshll.u32 %s398_s7, 4  ;;  %vm186_vm7 = vcmask 130048   ;;  %s196_s20 = int_to_ptr.hbm [resolvable:$true] %s195_s20 }
   0x8   :  { %v43_v4 = vld [vmem:[%s391_s0] sm:$0xff]  ;;  %106 = vmatpush.msra.mxu1 %v89_v5  ;;  %v88_v6 = vld [vmem:[%s394_s3 + $0x30] sm:$0xff]  ;;  %v87_v7 = vld [vmem:[%s394_s3 + $0x28] sm:$0xff]  ;;  %v160_v56 = vand.u32 127, %v159_v51 }
   0x9   :  { %69 = vmatpush.msra.mxu0 %v46_v1  ;;  %v86_v8 = vld [vmem:[%s394_s3 + $0x20] sm:$0xff]  ;;  %v85_v9 = vld [vmem:[%s394_s3 + $0x18] sm:$0xff]  ;;  %v84_v10 = vld [vmem:[%s394_s3 + $0x10] sm:$0xff] }
   0xa   :  { %107 = vmatpush.msra.mxu1 %v88_v6  ;;  %v83_v11 = vld [vmem:[%s394_s3 + $0x8] sm:$0xff]  ;;  %v82_v12 = vld [vmem:[%s394_s3] sm:$0xff]  ;;  %v131_v21 = vld [vmem:[%s396_s5 + $0x38] sm:$0xff]  ;;  %vm161_vm6 = vcmp.lt.s32.totalorder %v160_v56, 8 }
   0xb   :  { %70 = vmatpush.msra.mxu0 %v45_v2  ;;  %v214_v13 = vld [vmem:[%s393_s2] ss:$0 sm:$0xff]  ;;  %147 = vmatpush.msra.mxu2 %v131_v21  ;;  %v130_v22 = vld [vmem:[%s396_s5 + $0x30] sm:$0xff]  ;;  %v129_v23 = vld [vmem:[%s396_s5 + $0x28] sm:$0xff] }
   0xc   :  { %108 = vmatpush.msra.mxu1 %v87_v7  ;;  %v128_v24 = vld [vmem:[%s396_s5 + $0x20] sm:$0xff]  ;;  %v127_v25 = vld [vmem:[%s396_s5 + $0x18] sm:$0xff]  ;;  %v126_v26 = vld [vmem:[%s396_s5 + $0x10] sm:$0xff] }
   0xd   :  { %71 = vmatpush.msra.mxu0 %v44_v3  ;;  %148 = vmatpush.msra.mxu2 %v130_v22  ;;  %v125_v27 = vld [vmem:[%s396_s5 + $0x8] sm:$0xff]  ;;  %v124_v28 = vld [vmem:[%s396_s5] sm:$0xff] }
   0xe   :  { %205 = vmatmul.msk.f32.vlgmr.msra.gmra.mxu0 %vm52_vm0, %v43_v4  ;;  %109 = vmatpush.msra.mxu1 %v86_v8  ;;  %v215_v29 = vld [vmem:[%s395_s4] ss:$0 sm:$0xff]  ;;  %s282_s4 = smov [#allocation5]  }
   0xf   :  { %149 = vmatpush.msra.mxu2 %v129_v23  ;;  %v216_v37 = vld [vmem:[%s397_s6] ss:$0 sm:$0xff]  ;;  %s193_s5 = sshll.u32 %s282_s4, 4  ;;  %s194_s5 = int_to_ptr.vmem [resolvable:$true] %s193_s5 }
  0x10   :  { %110 = vmatpush.msra.mxu1 %v85_v9 }
  0x11   :  { %150 = vmatpush.msra.mxu2 %v128_v24 }
  0x12   :  { %111 = vmatpush.msra.mxu1 %v84_v10 }
  0x13   :  { %151 = vmatpush.msra.mxu2 %v127_v25 }
  0x14   :  { %112 = vmatpush.msra.mxu1 %v83_v11 }
  0x15   :  { %152 = vmatpush.msra.mxu2 %v126_v26 }
  0x16   :  { %113 = vmatpush.msra.mxu1 %v82_v12 }
  0x17   :  { %153 = vmatpush.msra.mxu2 %v125_v27 }
  0x19   :  { %154 = vmatpush.msra.mxu2 %v124_v28 }
  0x8b   :  { %v73_v14 = vpop.f32.mrf.mxu0 }
  0x8c   :  { %v74_v15 = vadd.f32 %v214_v13, %v73_v14 }
  0x8e   :  { %v77_v16 = vmin.f32 %v74_v15, 0.0  ;;  %vm76_vm2 = vcmp.gt.f32.partialorder %v74_v15, 0.0 }
  0x90   :  { %v78_v17 = vmul.f32 1.442695, %v77_v16 }
  0x92   :  { %217 = vpow2.f32 %v78_v17 }
  0x98   :  { %v218_v18 = vpop.eup %217 }
  0x99   :  { %v206_v19 = vadd.f32 -1.0, %v218_v18 }
  0x9b   :  { %v81_v20 = vsel %vm76_vm2, %v74_v15, %v206_v19 }
  0x9c   :  { %207 = vmatmul.msk.f32.vlgmr.msra.gmra.mxu1 %vm94_vm1, %v81_v20 }
 0x119   :  { %v115_v30 = vpop.f32.mrf.mxu1 }
 0x11a   :  { %v116_v31 = vadd.f32 %v215_v29, %v115_v30 }
 0x11c   :  { %v119_v32 = vmin.f32 %v116_v31, 0.0  ;;  %vm118_vm3 = vcmp.gt.f32.partialorder %v116_v31, 0.0 }
 0x11e   :  { %v120_v33 = vmul.f32 1.442695, %v119_v32 }
 0x120   :  { %219 = vpow2.f32 %v120_v33 }
 0x126   :  { %v220_v34 = vpop.eup %219 }
 0x127   :  { %v208_v35 = vadd.f32 -1.0, %v220_v34 }
 0x129   :  { %v123_v36 = vsel %vm118_vm3, %v116_v31, %v208_v35 }
 0x12a   :  { %209 = vmatmul.msk.f32.vlgmr.msra.gmra.mxu2 %vm94_vm1, %v123_v36 }
 0x1ad   :  { %v156_v38 = vpop.f32.mrf.mxu2 }
 0x1ae   :  { %v157_v39 = vadd.f32 %v216_v37, %v156_v38 }
 0x1b0   :  { %v163_v40 = vmax.f32 %v157_v39, -18.0 }
 0x1b2   :  { %v164_v41 = vadd.f32 1.8545866, %v163_v40 }
 0x1b4   :  { %v166_v42 = vsub.f32 0.0, %v164_v41  ;;  %v165_v55 = vmax.f32 %v164_v41, 0.0 }
 0x1b6   :  { %v169_v43 = vand.u32 2147483647, %v166_v42  ;;  %vm167_vm5 = vcmp.ne.f32.partialorder %v166_v42, %v166_v42 }
 0x1b8   :  { %v170_v44 = vsub.f32 0.0, %v169_v43 }
 0x1ba   :  { %v171_v45 = vmul.f32 1.442695, %v170_v44 }
 0x1bc   :  { %221 = vpow2.f32 %v171_v45 }
 0x1c2   :  { %v222_v46 = vpop.eup %221 }
 0x1c3   :  { %v173_v47 = vadd.f32 1.0, %v222_v46  ;;  %v176_v48 = vmul.f32 -0.5, %v222_v46  ;;  %v179_v50 = vand.u32 2147483647, %v222_v46 }
 0x1c5   :  { %223 = vlog2.f32 %v173_v47  ;;  %v177_v49 = vadd.f32 1.0, %v176_v48  ;;  %vm180_vm4 = vcmp.lt.f32.partialorder %v179_v50, 0.0004427343 }
 0x1c6   :  { %225 = vtanh.f32 %v157_v39 }
 0x1c7   :  { %v178_v54 = vmul.f32 %v222_v46, %v177_v49 }
 0x1cb   :  { %v224_v52 = vpop.eup %223 }
 0x1cc   :  { %v175_v53 = vmul.f32 0.6931472, %v224_v52  ;;  %v226_v61 = vpop.eup %225 }
 0x1ce   :  { %v181_v57 = vsel %vm180_vm4, %v178_v54, %v175_v53 }
 0x1cf   :  { %v182_v58 = vadd.f32 %v181_v57, %v165_v55 }
 0x1d1   :  { %v183_v59 = vsel %vm167_vm5, %v164_v41, %v182_v58 }
 0x1d2   :  { %v184_v60 = vadd.f32 1e-07, %v183_v59 }
 0x1d4   :  { %v185_v62 = vsel %vm161_vm6, %v226_v61, %v184_v60 }
 0x1d5   :  { %187 = vst.msk [vmem:[#allocation5] sm:$0xff] %vm186_vm7, %v185_v62 }
 0x1d6   :  { %198 = dma.vmem_to_hbm [thread:$0]  %s194_s5, 128, %s196_s20, [#allocation4]  }
 0x1d7   :  { %277 = dma.done.wait [#allocation4], 128  }
 0x1d8   :  { %278 = vsyncadd [#allocation4], 4294967168 }
 0x1d9   :  { %203 = vsyncpa [#allocation3], 1 }
 0x1da   :  { %204 = vsyncpa [#allocation4], 1 }

</bundles_post_ra>
